<compile_context>
chip_gen: v7x
topology: tpu7x:2x2x1
jax: 0.10.0
libtpu: 0.0.40
codegen_flags: <defaults>
</compile_context>

<pallas_src>
import numpy as np
import jax
import jax.numpy as jnp
from jax.experimental import pallas as pl
from jax.experimental.pallas import tpu as pltpu


def build_dense_interp_W(seq_len: int = 48, factor: int = 4) -> jnp.ndarray:
    """Deterministic buffer from DenseInterpolation.__init__ (unused in forward)."""
    W = np.zeros((factor, seq_len), dtype=np.float32)
    for t in range(seq_len):
        s = np.float32(factor * (t + 1) / seq_len)
        for m in range(factor):
            tmp = np.float32(1 - np.abs(s - (1 + m)) / factor)
            W[m, t] = np.power(tmp, 2, dtype=np.float32)
    return jnp.asarray(W)[None]  # (1, factor, seq_len)


def _round_up(v: int, m: int) -> int:
    return ((v + m - 1) // m) * m


def _interp_weights(record_num: jnp.ndarray, L: int) -> jnp.ndarray:
    """(B,) int -> (B, L, 1) f32 weights.  O(B*L) elementwise work in XLA."""
    B = record_num.shape[0]
    r = record_num.astype(jnp.int32).reshape(B, 1)
    # Clamp like Python/torch slicing for r >= 0 (r > L clamps to L).
    # TODO(synk): negative record_num (Python negative-index wraparound) is not replicated.
    end = jnp.clip(r, 0, L)                                # (B, 1)
    start = jnp.clip(r // 2, 0, L)                         # (B, 1)
    col = jnp.arange(L, dtype=jnp.int32)[None, :]          # (1, L)
    mask = (col >= start) & (col < end)                    # (B, L)
    cnt = (end - start).astype(jnp.float32)                # (B, 1)
    # mask/cnt: 1/cnt inside the window, 0 outside; empty window -> 0/0 = NaN
    # across the row, so the kernel's weighted sum reproduces torch.mean of an
    # empty slice exactly.
    w = mask.astype(jnp.float32) / cnt                     # (B, L)
    return w[:, :, None]                                   # (B, L, 1)


def _weighted_mean_kernel(w_ref, x_ref, o_ref):
    # w_ref: (TB, L, 1) f32 — precomputed per-(row, timestep) weight.
    # x_ref: (TB, L, TD)    — payload tile.
    # o_ref: (TB, TD)       — weighted sum over L == masked mean.
    xv = x_ref[...].astype(jnp.float32)
    o_ref[...] = jnp.sum(xv * w_ref[...], axis=1).astype(o_ref.dtype)


def dense_interpolation_forward(
    x: jnp.ndarray,
    record_num: jnp.ndarray,
    *,
    target_block_bytes: int = 4 << 20,
) -> jnp.ndarray:
    """x: (B, L, D) float, record_num: (B,) int -> (B, D) float.

    target_block_bytes budgets the *padded* VMEM footprint of one (x, w) input
    block pair.  4 MiB double-buffers safely under every chip's default scoped
    VMEM (v5e 16 MiB / v6e 32 MiB / v7x 32 MiB); it can be raised to ~8 MiB on
    v6e for a few extra % of HBM roofline.
    """
    B, L, D = x.shape
    itemsize = x.dtype.itemsize
    sublane = {4: 8, 2: 16, 1: 32}.get(itemsize, 8)
    Lp_x = _round_up(L, sublane)          # sublane padding of L in the x block
    Lp_w = _round_up(L, 8)                # weights are f32
    Dp = _round_up(D, 128)

    # ---- lane tile TD over D: full D unless one padded row overshoots the budget.
    if Lp_x * Dp * itemsize <= target_block_bytes or Dp <= 128:
        TD = D
    else:
        slab = Lp_x * 128 * itemsize                      # one 128-lane slab of a row
        TD = int(min(Dp, max(1, target_block_bytes // slab) * 128))
        if TD >= D:
            TD = D
    TDp = _round_up(TD, 128)
    nd = pl.cdiv(D, TD)

    # ---- batch tile TB from the *padded* per-row footprint of the (x, w) blocks.
    x_row_bytes = Lp_x * TDp * itemsize
    w_row_bytes = Lp_w * 128 * 4                          # (L, 1) block pads lanes to 128
    row_bytes = x_row_bytes + w_row_bytes
    tb = max(1, target_block_bytes // row_bytes)
    if tb >= B:
        TB = B
        # v7x: its two TensorCores split the "parallel" grid; guarantee >= 2
        # grid steps when there is enough streaming work (no effect on the
        # single-TC v5e/v6e).
        if nd == 1 and B >= 16 and B * row_bytes >= (2 << 20):
            TB = min(B, _round_up((B + 1) // 2, 8))
    else:
        # TB must be a multiple of 8 (sublane rule for the (TB, TD) output and
        # (TB, L, 1) weight blocks) unless it spans the whole batch.
        TB = min(B, max(8, (tb // 8) * 8))

    weights = _interp_weights(record_num, L)              # (B, L, 1) f32

    # Only raise the scoped-VMEM limit when the padded footprint needs it.
    vmem_need = 2 * (TB * row_bytes + _round_up(TB, sublane) * TDp * itemsize)
    cp_kwargs = {}
    if vmem_need > (14 << 20):
        cp_kwargs["vmem_limit_bytes"] = int(min(vmem_need + (2 << 20), 64 << 20))

    cost = pl.CostEstimate(
        flops=2 * B * L * D,
        transcendentals=0,
        bytes_accessed=B * L * D * itemsize + B * L * 4 + B * D * itemsize,
    )

    # TODO(synk): for very large L*D rows, skip DMAing x[:, :mid, :] entirely
    # (scalar-prefetched per-block row ranges + pl.ds/BoundedSlice on L) for up
    # to ~2x HBM savings when record_num ~= L; not worth the ragged-block
    # complexity at these sizes.
    return pl.pallas_call(
        _weighted_mean_kernel,
        out_shape=jax.ShapeDtypeStruct((B, D), x.dtype),
        grid_spec=pltpu.PrefetchScalarGridSpec(
            num_scalar_prefetch=0,
            grid=(pl.cdiv(B, TB), nd),
            in_specs=[
                pl.BlockSpec((TB, L, 1), lambda i, j: (i, 0, 0)),   # weights
                pl.BlockSpec((TB, L, TD), lambda i, j: (i, 0, j)),  # x
            ],
            out_specs=pl.BlockSpec((TB, TD), lambda i, j: (i, j)),
        ),
        compiler_params=pltpu.CompilerParams(
            # Disjoint output blocks on both grid axes -> embarrassingly parallel.
            dimension_semantics=("parallel", "parallel"),
            **cp_kwargs,
        ),
        cost_estimate=cost,
    )(weights, x)


def _reference(x, record_num):
    """Pure-JAX reference with identical semantics (for verification)."""
    outs = []
    for i in range(x.shape[0]):
        r = int(record_num[i])
        mid = r // 2
        outs.append(jnp.mean(x[i, mid:r, :], axis=0))
    return jnp.stack(outs, axis=0)


if __name__ == "__main__":
    key = jax.random.PRNGKey(0)
    k1, k2, k3, k4, k5 = jax.random.split(key, 5)

    # Unused-in-forward buffer, built for fidelity with the module's __init__.
    W = build_dense_interp_W(seq_len=8, factor=4)
    assert W.shape == (1, 4, 8)

    # --- Test 1: module-sized small case (single grid step, TB == B) ---
    B, L, D = 2, 8, 32
    x = jax.random.normal(k1, (B, L, D), dtype=jnp.float32)
    record_num = jnp.array([6, 8], dtype=jnp.int32)
    out = jax.block_until_ready(dense_interpolation_forward(x, record_num))
    ref = _reference(x, record_num)
    assert out.shape == (B, D)
    assert jnp.allclose(out, ref, atol=1e-5, rtol=1e-5), (out, ref)

    # --- Test 2: multi-step batch grid (TB = 8 -> grid (3, 1)) ---
    B2 = 24
    x2 = jax.random.normal(k2, (B2, L, D), dtype=jnp.float32)
    rec2 = jax.random.randint(k3, (B2,), 1, L + 1, dtype=jnp.int32)
    # Padded per-row bytes: x 8*128*4 + w 8*128*4 = 8 KiB -> 64 KiB target gives TB=8.
    out2 = jax.block_until_ready(
        dense_interpolation_forward(x2, rec2, target_block_bytes=64 << 10))
    assert jnp.allclose(out2, _reference(x2, rec2), atol=1e-5, rtol=1e-5)

    # --- Test 3: ragged last batch block (B % TB != 0) ---
    B3 = 26
    x3 = jax.random.normal(k4, (B3, L, D), dtype=jnp.float32)
    rec3 = jax.random.randint(k5, (B3,), 1, L + 1, dtype=jnp.int32)
    out3 = jax.block_until_ready(
        dense_interpolation_forward(x3, rec3, target_block_bytes=64 << 10))
    assert jnp.allclose(out3, _reference(x3, rec3), atol=1e-5, rtol=1e-5)

    # --- Test 4: D-axis blocking path (TD = 128, grid (1, 2)) ---
    B4, L4, D4 = 4, 16, 256
    x4 = jax.random.normal(k1, (B4, L4, D4), dtype=jnp.float32)
    rec4 = jnp.array([3, 16, 9, 1], dtype=jnp.int32)
    out4 = jax.block_until_ready(
        dense_interpolation_forward(x4, rec4, target_block_bytes=8 << 10))
    assert jnp.allclose(out4, _reference(x4, rec4), atol=1e-5, rtol=1e-5)

    print("KERNEL_OK")
</pallas_src>

<mosaic_0001>
module attributes {stable_mosaic.version = 11 : i64} {
  func.func @_weighted_mean_kernel(%arg0: i32, %arg1: i32, %arg2: memref<2x8x1xf32, #tpu.memory_space<vmem>>, %arg3: memref<2x8x32xf32, #tpu.memory_space<vmem>>, %arg4: memref<2x32xf32, #tpu.memory_space<vmem>>) attributes {dimension_semantics = [#tpu.dimension_semantics<parallel>, #tpu.dimension_semantics<parallel>], iteration_bounds = array<i64: 1, 1>, scalar_prefetch = 0 : i64, scratch_operands = 0 : i64, tpu.core_type = #tpu.core_type<tc>, window_params = [{transform_indices = @transform_0, window_bounds = array<i64: 2, 8, 1>}, {transform_indices = @transform_1, window_bounds = array<i64: 2, 8, 32>}, {transform_indices = @transform_2, window_bounds = array<i64: 2, 32>}]} {
    %c0 = arith.constant 0 : index
    %c0_0 = arith.constant 0 : index
    %c0_1 = arith.constant 0 : index
    %0 = vector.load %arg3[%c0, %c0_0, %c0_1] : memref<2x8x32xf32, #tpu.memory_space<vmem>>, vector<2x8x32xf32>
    %c0_2 = arith.constant 0 : index
    %c0_3 = arith.constant 0 : index
    %c0_4 = arith.constant 0 : index
    %1 = vector.load %arg2[%c0_2, %c0_3, %c0_4] : memref<2x8x1xf32, #tpu.memory_space<vmem>>, vector<2x8x1xf32>
    %2 = vector.broadcast %1 : vector<2x8x1xf32> to vector<2x8x32xf32>
    %3 = arith.mulf %0, %2 : vector<2x8x32xf32>
    %cst = arith.constant dense<0.000000e+00> : vector<2x32xf32>
    %4 = vector.multi_reduction <add>, %3, %cst [1] : vector<2x8x32xf32> to vector<2x32xf32>
    %c0_5 = arith.constant 0 : index
    %c0_6 = arith.constant 0 : index
    %5 = vector.load %arg4[%c0_5, %c0_6] : memref<2x32xf32, #tpu.memory_space<vmem>>, vector<2x32xf32>
    tpu.vector_store %arg4[%c0_5, %c0_6], %4 {strides = array<i32>} : memref<2x32xf32, #tpu.memory_space<vmem>>, vector<2x32xf32>,
    return
  }
  func.func @transform_0(%arg0: i32, %arg1: i32) -> (i32, i32, i32) {
    %c0_i32 = arith.constant 0 : i32
    %c0_i32_0 = arith.constant 0 : i32
    %c0_i32_1 = arith.constant 0 : i32
    return %arg0, %c0_i32, %c0_i32_0 : i32, i32, i32
  }
  func.func @transform_1(%arg0: i32, %arg1: i32) -> (i32, i32, i32) {
    %c0_i32 = arith.constant 0 : i32
    %c0_i32_0 = arith.constant 0 : i32
    return %arg0, %c0_i32, %arg1 : i32, i32, i32
  }
  func.func @transform_2(%arg0: i32, %arg1: i32) -> (i32, i32) {
    %c0_i32 = arith.constant 0 : i32
    return %arg0, %arg1 : i32, i32
  }
}

</mosaic_0001>

<bundles_post_ra>
// kernel: tpu_custom_call.1
= control target key start
LH: loop header
LB: loop body
LE: loop exit
PB: predicated region body
PF: predicated region fallthrough
CT: control target
= control target key end

     0   :  { %s132_s0 = inlined_call_operand.vmem [shape: f32[2,8,1], index: 0, kind: input, shape index: {}]   ;;  %s133_s1 = inlined_call_operand.vmem [shape: f32[2,8,32], index: 1, kind: input, shape index: {}]   ;;  %s134_s2 = inlined_call_operand.hbm [shape: f32[2,32], index: 2, kind: output, shape index: {}]  }
   0x1   :  { %v14_v0 = vld [vmem:[%s132_s0] sm:$0xff] }
   0x2   :  { %7 = vsyncpa [#allocation3], 0  ;;  %v91_v1 = vmov 0   ;;  %v15_v2 = vld [vmem:[%s132_s0 + $0x8] sm:$0xff]  ;;  %v12_v3 = vld [vmem:[%s133_s1] sm:$0xff]  ;;  %vm28_vm0 = vcmask 261120  }
   0x3   :  { %66 = vset.pattern.permute.xlu0 %v91_v1  ;;  %v13_v6 = vld [vmem:[%s133_s1 + $0x8] sm:$0xff]  ;;  %s92_s0 = smov [#allocation2]   ;;  %vm45_vm1 = vcmask 1041409   ;;  %vm48_vm2 = vcmask 254976  }
   0x4   :  { %18 = vperm.xlu0 %66, %v14_v0   ;;  %s56_s17 = sshll.u32 %s92_s0, 4  ;;  %s57_s17 = int_to_ptr.vmem [resolvable:$true] %s56_s17 }
   0x5   :  { %s67_s1 = scalar_lea.vmem %s57_s17, 32  ;;  %p72_p1 = scmp.lt.s32.totalorder %s57_s17, %s57_s17 }
   0x6   :  { %p68_p0 = scmp.ne.s32.totalorder %s57_s17, %s67_s1  ;;  %p73_p2 = scmp.lt.s32.totalorder %s67_s1, %s67_s1 }
   0x8   :  { %23 = vperm.xlu0 %66, %v15_v2   ;;  %p74_p3 = por %p73_p2, %p72_p1 }
   0xa   :  { %p75_p4 = pnand %p74_p3, %p68_p0 }
  0x83   :  { %v19_v4 = vpop.permute.xlu0 %18 }
  0x84   :  { %v26_v5 = vmul.f32 %v19_v4, %v12_v3 }
  0x86   :  { %v29_v7 = vsel %vm28_vm0, %v26_v5, 0.0 }
  0x87   :  { %v30_v8 = vrot.slane %v29_v7, 4  ;;  %v24_v9 = vpop.permute.xlu0 %23 }
  0x88   :  { %v27_v10 = vmul.f32 %v24_v9, %v13_v6 }
  0x89   :  { %v31_v11 = vadd.f32 %v30_v8, %v29_v7 }
  0x8a   :  { %v36_v12 = vsel %vm28_vm0, %v27_v10, 0.0 }
  0x8b   :  { %v32_v13 = vrot.slane %v31_v11, 2  ;;  %v37_v14 = vrot.slane %v36_v12, 4 }
  0x8d   :  { %v33_v15 = vadd.f32 %v32_v13, %v31_v11  ;;  %v38_v16 = vadd.f32 %v37_v14, %v36_v12 }
  0x8f   :  { %v39_v17 = vrot.slane %v38_v16, 2  ;;  %v34_v18 = vrot.slane %v33_v15, 1 }
  0x91   :  { %v40_v19 = vadd.f32 %v39_v17, %v38_v16  ;;  %v35_v21 = vadd.f32 %v34_v18, %v33_v15 }
  0x93   :  { %v41_v20 = vrot.slane %v40_v19, 1 }
  0x95   :  { %v42_v22 = vadd.f32 %v41_v20, %v40_v19 }
  0x97   :  { %v46_v23 = vsel %vm45_vm1, %v42_v22, %v35_v21 }
  0x98   :  { %49 = vst.msk [vmem:[#allocation2] sm:$0x3] %vm48_vm2, %v46_v23 }
  0x99   :  { %78 = shalt.err (!%p75_p4)
}
  0x9a   :  { %s79_s20 = scalar_lea.hbm %s134_s2, 32 }
  0x9b   :  { %p80_p5 = scmp.ne.s32.totalorder %s134_s2, %s79_s20  ;;  %p83_p6 = scmp.lt.u32.totalorder %s79_s20, %s134_s2 }
  0x9d   :  { %p85_p7 = pnand %p83_p6, %p80_p5 }
  0x9f   :  { %88 = shalt.err (!%p85_p7)
}
  0xa0   :  { %59 = dma.vmem_to_hbm [thread:$0]  %s57_s17, 32, %s134_s2, [#allocation3]  }
  0xa1   :  { %89 = dma.done.wait [#allocation3], 32  }
  0xa2   :  { %90 = vsyncadd [#allocation3], 4294967264 }
  0xa3   :  { %63 = vsyncpa [#allocation3], 1 }

</bundles_post_ra>
